<compile_context>
chip_gen: v6e
topology: v6e:2x2x1
jax: 0.10.0
libtpu: 0.0.40
codegen_flags: <defaults>
</compile_context>

<pallas_src>
import jax
import jax.numpy as jnp
from jax.experimental import pallas as pl
from jax.experimental.pallas import tpu as pltpu

N_OUT_PAD = 128  # lane-dense padded width for the final layer / output store


def mlp_kernel(x_ref, w1_ref, b1_ref, w2_ref, b2_ref, w3p_ref, b3p_ref, o_ref):
    # x tile: (TB, 2) f32
    x = x_ref[...]
    w1 = w1_ref[...]                                   # (2, 32)

    # layer_1 on the VPU: K=2 is far too small for the MXU.
    #   h1 = x[:,0:1]*W1[0,:] + x[:,1:2]*W1[1,:] + b1
    h1 = x[:, 0:1] * w1[0:1, :] + x[:, 1:2] * w1[1:2, :] + b1_ref[...]
    h1 = jnp.maximum(h1, 0.0)                          # ReLU, (TB, 32)

    # layer_2 on the MXU: (TB, 32) @ (32, 32) + (1, 32)
    h2 = jnp.dot(h1, w2_ref[...], preferred_element_type=jnp.float32) + b2_ref[...]
    h2 = jnp.maximum(h2, 0.0)                          # ReLU, (TB, 32)

    # layer_3 on the MXU with N zero-padded 1 -> 128 so the output store is
    # lane-dense (unmasked vst). Columns 1..127 are exactly zero-weight.
    out = jnp.dot(h2, w3p_ref[...], preferred_element_type=jnp.float32) + b3p_ref[...]
    o_ref[...] = out                                   # (TB, 128)


def circle_model_1(x, w1, b1, w2, b2, w3, b3, *, tb=256):
    """x: (B, 2) float32 -> (B, 1) float32 (logits).

    tb: batch tile (multiple of 8). Per-tile VMEM is ~(tb*2 + tb*128)*4 bytes
    plus tiny weights -> sized well under the 32 MiB scoped default on v7x's
    64 MiB VMEM even for tb up to several thousand.
    NOTE: for tiny B (<= a few thousand) plain XLA jnp is just as fast; this
    kernel pays off at large B.
    """
    B = x.shape[0]

    # Pad final layer to a lane-dense width (real logit lives in column 0).
    w3p = jnp.zeros((w3.shape[0], N_OUT_PAD), w3.dtype).at[:, :1].set(w3)
    b3p = jnp.zeros((1, N_OUT_PAD), b3.dtype).at[:, :1].set(b3)

    # Pad batch to a multiple of the tile size.
    n_tiles = pl.cdiv(B, tb)
    b_pad = n_tiles * tb
    if b_pad != B:
        x = jnp.pad(x, ((0, b_pad - B), (0, 0)))

    const = lambda a: pl.BlockSpec(a.shape, lambda i: (0, 0))

    out_pad = pl.pallas_call(
        mlp_kernel,
        out_shape=jax.ShapeDtypeStruct((b_pad, N_OUT_PAD), jnp.float32),
        grid=(n_tiles,),
        in_specs=[
            pl.BlockSpec((tb, 2), lambda i: (i, 0)),   # x: tiled over batch
            const(w1), const(b1),                      # constant weight blocks
            const(w2), const(b2),
            const(w3p), const(b3p),
        ],
        out_specs=pl.BlockSpec((tb, N_OUT_PAD), lambda i: (i, 0)),
        compiler_params=pltpu.CompilerParams(
            dimension_semantics=("parallel",),         # shard batch across TCs (v7x)
        ),
    )(x, w1, b1, w2, b2, w3p, b3p)

    # Strip batch padding and the zero-padded output columns outside the kernel.
    return out_pad[:B, :1]


def init_params(key):
    """Deterministic init matching nn.Linear shapes (weights stored transposed)."""
    k1, k2, k3, k4, k5, k6 = jax.random.split(key, 6)

    def linear_init(kw, kb, fan_in, fan_out):
        # mimic PyTorch's uniform(-1/sqrt(fan_in), 1/sqrt(fan_in)) init
        bound = 1.0 / jnp.sqrt(jnp.float32(fan_in))
        w = jax.random.uniform(kw, (fan_in, fan_out), jnp.float32, -bound, bound)
        b = jax.random.uniform(kb, (1, fan_out), jnp.float32, -bound, bound)
        return w, b

    w1, b1 = linear_init(k1, k2, 2, 32)
    w2, b2 = linear_init(k3, k4, 32, 32)
    w3, b3 = linear_init(k5, k6, 32, 1)
    return w1, b1, w2, b2, w3, b3


def reference(x, w1, b1, w2, b2, w3, b3):
    h1 = jnp.maximum(x @ w1 + b1, 0.0)
    h2 = jnp.maximum(h1 @ w2 + b2, 0.0)
    return h2 @ w3 + b3


if __name__ == "__main__":
    key = jax.random.PRNGKey(0)
    kx, kp = jax.random.split(key)

    B = 1000  # non-multiple of the tile size to exercise the padding path
    x = jax.random.normal(kx, (B, 2), dtype=jnp.float32)
    params = init_params(kp)

    out = circle_model_1(x, *params, tb=256)
    out = jax.block_until_ready(out)

    ref = reference(x, *params)
    assert out.shape == (B, 1), out.shape
    assert jnp.allclose(out, ref, atol=1e-5, rtol=1e-5), (out, ref)

    print("KERNEL_OK")
</pallas_src>

<mosaic_0001>
module attributes {stable_mosaic.version = 11 : i64} {
  func.func @mlp_kernel(%arg0: i32, %arg1: memref<256x2xf32, #tpu.memory_space<vmem>>, %arg2: memref<2x32xf32, #tpu.memory_space<vmem>>, %arg3: memref<1x32xf32, #tpu.memory_space<vmem>>, %arg4: memref<32x32xf32, #tpu.memory_space<vmem>>, %arg5: memref<1x32xf32, #tpu.memory_space<vmem>>, %arg6: memref<32x128xf32, #tpu.memory_space<vmem>>, %arg7: memref<1x128xf32, #tpu.memory_space<vmem>>, %arg8: memref<256x128xf32, #tpu.memory_space<vmem>>) attributes {dimension_semantics = [#tpu.dimension_semantics<parallel>], iteration_bounds = array<i64: 4>, scalar_prefetch = 0 : i64, scratch_operands = 0 : i64, tpu.core_type = #tpu.core_type<tc>, window_params = [{transform_indices = @transform_0, window_bounds = array<i64: 256, 2>}, {pipeline_mode = #tpu.pipeline_mode<synchronous>, transform_indices = @transform_1, window_bounds = array<i64: 2, 32>}, {pipeline_mode = #tpu.pipeline_mode<synchronous>, transform_indices = @transform_2, window_bounds = array<i64: 1, 32>}, {pipeline_mode = #tpu.pipeline_mode<synchronous>, transform_indices = @transform_3, window_bounds = array<i64: 32, 32>}, {pipeline_mode = #tpu.pipeline_mode<synchronous>, transform_indices = @transform_4, window_bounds = array<i64: 1, 32>}, {pipeline_mode = #tpu.pipeline_mode<synchronous>, transform_indices = @transform_5, window_bounds = array<i64: 32, 128>}, {pipeline_mode = #tpu.pipeline_mode<synchronous>, transform_indices = @transform_6, window_bounds = array<i64: 1, 128>}, {transform_indices = @transform_7, window_bounds = array<i64: 256, 128>}]} {
    %c0 = arith.constant 0 : index
    %c0_0 = arith.constant 0 : index
    %0 = vector.load %arg1[%c0, %c0_0] : memref<256x2xf32, #tpu.memory_space<vmem>>, vector<256x2xf32>
    %c0_1 = arith.constant 0 : index
    %c0_2 = arith.constant 0 : index
    %1 = vector.load %arg2[%c0_1, %c0_2] : memref<2x32xf32, #tpu.memory_space<vmem>>, vector<2x32xf32>
    %2 = vector.extract_strided_slice %0 {offsets = [0, 0], sizes = [256, 1], strides = [1, 1]} : vector<256x2xf32> to vector<256x1xf32>
    %3 = vector.extract_strided_slice %1 {offsets = [0, 0], sizes = [1, 32], strides = [1, 1]} : vector<2x32xf32> to vector<1x32xf32>
    %4 = vector.broadcast %2 : vector<256x1xf32> to vector<256x32xf32>
    %5 = vector.broadcast %3 : vector<1x32xf32> to vector<256x32xf32>
    %6 = arith.mulf %4, %5 : vector<256x32xf32>
    %7 = vector.extract_strided_slice %0 {offsets = [0, 1], sizes = [256, 1], strides = [1, 1]} : vector<256x2xf32> to vector<256x1xf32>
    %8 = vector.extract_strided_slice %1 {offsets = [1, 0], sizes = [1, 32], strides = [1, 1]} : vector<2x32xf32> to vector<1x32xf32>
    %9 = vector.broadcast %7 : vector<256x1xf32> to vector<256x32xf32>
    %10 = vector.broadcast %8 : vector<1x32xf32> to vector<256x32xf32>
    %11 = arith.mulf %9, %10 : vector<256x32xf32>
    %12 = arith.addf %6, %11 : vector<256x32xf32>
    %c0_3 = arith.constant 0 : index
    %c0_4 = arith.constant 0 : index
    %13 = vector.load %arg3[%c0_3, %c0_4] : memref<1x32xf32, #tpu.memory_space<vmem>>, vector<1x32xf32>
    %14 = vector.broadcast %13 : vector<1x32xf32> to vector<256x32xf32>
    %15 = arith.addf %12, %14 : vector<256x32xf32>
    %cst = arith.constant 0.000000e+00 : f32
    %16 = vector.broadcast %cst : f32 to vector<256x32xf32>
    %17 = arith.maximumf %15, %16 : vector<256x32xf32>
    %c0_5 = arith.constant 0 : index
    %c0_6 = arith.constant 0 : index
    %18 = vector.load %arg4[%c0_5, %c0_6] : memref<32x32xf32, #tpu.memory_space<vmem>>, vector<32x32xf32>
    %cst_7 = arith.constant dense<0.000000e+00> : vector<256x32xf32>
    %19 = tpu.matmul %17, %18, %cst_7 {dimension_numbers = #tpu.dot_dimension_numbers<[1], [0], [0], [1], [0, 0, 1, 1], [], []>} : vector<256x32xf32>, vector<32x32xf32>, vector<256x32xf32> -> vector<256x32xf32>
    %c0_8 = arith.constant 0 : index
    %c0_9 = arith.constant 0 : index
    %20 = vector.load %arg5[%c0_8, %c0_9] : memref<1x32xf32, #tpu.memory_space<vmem>>, vector<1x32xf32>
    %21 = vector.broadcast %20 : vector<1x32xf32> to vector<256x32xf32>
    %22 = arith.addf %19, %21 : vector<256x32xf32>
    %cst_10 = arith.constant 0.000000e+00 : f32
    %23 = vector.broadcast %cst_10 : f32 to vector<256x32xf32>
    %24 = arith.maximumf %22, %23 : vector<256x32xf32>
    %c0_11 = arith.constant 0 : index
    %c0_12 = arith.constant 0 : index
    %25 = vector.load %arg6[%c0_11, %c0_12] : memref<32x128xf32, #tpu.memory_space<vmem>>, vector<32x128xf32>
    %cst_13 = arith.constant dense<0.000000e+00> : vector<256x128xf32>
    %26 = tpu.matmul %24, %25, %cst_13 {dimension_numbers = #tpu.dot_dimension_numbers<[1], [0], [0], [1], [0, 0, 1, 1], [], []>} : vector<256x32xf32>, vector<32x128xf32>, vector<256x128xf32> -> vector<256x128xf32>
    %c0_14 = arith.constant 0 : index
    %c0_15 = arith.constant 0 : index
    %27 = vector.load %arg7[%c0_14, %c0_15] : memref<1x128xf32, #tpu.memory_space<vmem>>, vector<1x128xf32>
    %28 = vector.broadcast %27 : vector<1x128xf32> to vector<256x128xf32>
    %29 = arith.addf %26, %28 : vector<256x128xf32>
    %c0_16 = arith.constant 0 : index
    %c0_17 = arith.constant 0 : index
    %30 = vector.load %arg8[%c0_16, %c0_17] : memref<256x128xf32, #tpu.memory_space<vmem>>, vector<256x128xf32>
    tpu.vector_store %arg8[%c0_16, %c0_17], %29 {strides = array<i32>} : memref<256x128xf32, #tpu.memory_space<vmem>>, vector<256x128xf32>,
    return
  }
  func.func @transform_0(%arg0: i32) -> (i32, i32) {
    %c0_i32 = arith.constant 0 : i32
    %c0_i32_0 = arith.constant 0 : i32
    return %arg0, %c0_i32 : i32, i32
  }
  func.func @transform_1(%arg0: i32) -> (i32, i32) {
    %c0_i32 = arith.constant 0 : i32
    %c0_i32_0 = arith.constant 0 : i32
    %c0_i32_1 = arith.constant 0 : i32
    return %c0_i32, %c0_i32_0 : i32, i32
  }
  func.func @transform_2(%arg0: i32) -> (i32, i32) {
    %c0_i32 = arith.constant 0 : i32
    %c0_i32_0 = arith.constant 0 : i32
    %c0_i32_1 = arith.constant 0 : i32
    return %c0_i32, %c0_i32_0 : i32, i32
  }
  func.func @transform_3(%arg0: i32) -> (i32, i32) {
    %c0_i32 = arith.constant 0 : i32
    %c0_i32_0 = arith.constant 0 : i32
    %c0_i32_1 = arith.constant 0 : i32
    return %c0_i32, %c0_i32_0 : i32, i32
  }
  func.func @transform_4(%arg0: i32) -> (i32, i32) {
    %c0_i32 = arith.constant 0 : i32
    %c0_i32_0 = arith.constant 0 : i32
    %c0_i32_1 = arith.constant 0 : i32
    return %c0_i32, %c0_i32_0 : i32, i32
  }
  func.func @transform_5(%arg0: i32) -> (i32, i32) {
    %c0_i32 = arith.constant 0 : i32
    %c0_i32_0 = arith.constant 0 : i32
    %c0_i32_1 = arith.constant 0 : i32
    return %c0_i32, %c0_i32_0 : i32, i32
  }
  func.func @transform_6(%arg0: i32) -> (i32, i32) {
    %c0_i32 = arith.constant 0 : i32
    %c0_i32_0 = arith.constant 0 : i32
    %c0_i32_1 = arith.constant 0 : i32
    return %c0_i32, %c0_i32_0 : i32, i32
  }
  func.func @transform_7(%arg0: i32) -> (i32, i32) {
    %c0_i32 = arith.constant 0 : i32
    %c0_i32_0 = arith.constant 0 : i32
    return %arg0, %c0_i32 : i32, i32
  }
}

</mosaic_0001>

<bundles_post_ra>
// kernel: tpu_custom_call.1
= control target key start
LH: loop header
LB: loop body
LE: loop exit
PB: predicated region body
PF: predicated region fallthrough
CT: control target
= control target key end

     0   :  { %12 = vsyncpa [#allocation3], 0  ;;  %s2444_s0 = inlined_call_operand.vmem [shape: f32[1024,2], index: 0, kind: input, shape index: {}]   ;;  %s2445_s1 = inlined_call_operand.vmem [shape: f32[2,32], index: 1, kind: input, shape index: {}]   ;;  %s2446_s2 = inlined_call_operand.vmem [shape: f32[1,32], index: 2, kind: input, shape index: {}]   ;;  %s2447_s3 = inlined_call_operand.vmem [shape: f32[32,32], index: 3, kind: input, shape index: {}]   ;;  %s2448_s4 = inlined_call_operand.vmem [shape: f32[1,32], index: 4, kind: input, shape index: {}]   ;;  %s2449_s5 = inlined_call_operand.vmem [shape: f32[32,128], index: 5, kind: input, shape index: {}]   ;;  %s2450_s6 = inlined_call_operand.vmem [shape: f32[1,128], index: 6, kind: input, shape index: {}]   ;;  %s2451_s7 = inlined_call_operand.hbm [shape: f32[1024,128], index: 7, kind: output, shape index: {}]  }
   0x1   :  { %14 = vsyncpa [#allocation3 + $0x1], 0  ;;  %s2000_s24 = smov 0   ;;  %s2002_s25 = smov 0  }
   0x2   :  { %s2004_s26 = smov 0   ;;  %s2006_s27 = smov 0  }
   0x3 LB: > { %s2021_s28 = sadd.s32 4294967295, %s1953_s27   ;;  %s1581_s29 = sadd.s32 4294967294, %s1953_s27   ;;  %s1953_s27 = sphi %s2006_s27, %s2457_s27   ;;  %s1949_s26 = sphi %s2004_s26, %s2456_s26   ;;  %s1945_s25 = sphi %s2002_s25, %s2455_s25   ;;  %s1941_s24 = sphi %s2000_s24, %s2454_s24  }
   0x4   : > { %s2025_s30 = sadd.s32 1, %s1953_s27   ;;  %s179_s8 = sadd.s32 1, %s1949_s26 }
   0x5   : > { %s176_s9 = ssub.s32 %s1953_s27, %s2025_s30  ;;  %p189_p0 = scmp.ne.s32.totalorder %s1949_s26, %s1945_s25 }
   0x6   : > { %p177_p1 = scmp.eq.s32.totalorder %s176_s9, 0  ;;  %p190_p2 = scmp.eq.s32.totalorder %s2021_s28, 3 }
   0x7   : > { %p195_p3 = scmp.ne.s32.totalorder %s1945_s25, %s1941_s24  ;;  %p196_p4 = scmp.eq.s32.totalorder %s1581_s29, 3 }
   0x8   : > { %s2036_s10 = scalar_select %p177_p1, %s1949_s26, %s179_s8  }
   0x9   : > { %p2038_p5 = por %p190_p2, %p189_p0  ;;  %p2042_p6 = por %p196_p4, %p195_p3 }
   0xa   : > { %p1584_p7 = scmp.ge.s32.totalorder %s1953_s27, 1  ;;  %p241_p8 = scmp.lt.s32.totalorder %s1953_s27, 5 }
   0xc   : > { %p242_p9 = pnand %p1584_p7, %p241_p8 }
   0xd   : > { %s1586_s13 = sshll.u32 (!%p242_p9), %s2021_s28, 5  ;;  %s270_s9 = sand.u32 (!%p242_p9), 1, %s1945_s25  }
   0xe   : > { %245 = sbr.rel (%p242_p9) target bundleno = 692 (0x2b4), region = 48  ;;  %p274_p10 = scmp.lt.s32.totalorder (!%p242_p9), %s1586_s13, 127 }
   0xf   : > { %s1957_s23 = smov (!%p242_p9), [#allocation2]  }
  0x10   : > { %s1897_s29 = sshll.u32 (!%p242_p9), %s1957_s23, 4  ;;  %s1898_s29 = int_to_ptr.vmem [resolvable:$false] %s1897_s29 }
  0x11   : > { %s1899_s8 = scalar_lea.vmem (!%p242_p9), %s1898_s29, 8192 }
  0x13   : > { %v1955_v0 = vmov 0   ;;  %s2459_s13 = smov (!%p274_p10, %s1586_s13), 127  ;;  %v1956_v3 = vmov 1   ;;  %v779_v5 = vld [vmem:[%s2447_s3 + $0x18] sm:$0xff]  ;;  %v778_v7 = vld [vmem:[%s2447_s3 + $0x10] sm:$0xff]  ;;  %v777_v8 = vld [vmem:[%s2447_s3 + $0x8] sm:$0xff]  ;;  %v473_v35 = vlaneseq }
  0x14   : > { %1890 = vset.pattern.permute.xlu1 %v1955_v0  ;;  %1888 = vset.pattern.permute.xlu0 %v1955_v0  ;;  %s1587_s14 = sshll.u32 %s2459_s13, 3  ;;  %v776_v9 = vld [vmem:[%s2447_s3] sm:$0xff]  ;;  %vm787_vm0 = vcmask 261120   ;;  %s1585_s13 = sshll.u32 %s270_s9, 8 }
  0x15   : > { %s2052_s17 = scalar_lea.vmem %s2444_s0, %s1587_s14  ;;  %1733 = vmatprep.subr.mxu0 %v779_v5  ;;  %v474_v37 = vshrl.u32 %v473_v35, 7  ;;  %v312_v41 = vld [vmem:[%s2445_s1] sm:$0x3]  ;;  %s2328_s16 = scalar_lea.vmem [#allocation2], %s1585_s13 }
  0x16   : > { %v281_v1 = vld [vmem:[%s2052_s17 + $0x8] sm:$0xff]  ;;  %v280_v2 = vld [vmem:[%s2052_s17] sm:$0xff]  ;;  %v282_v4 = vld [vmem:[%s2052_s17 + $0x10] sm:$0xff]  ;;  %1734 = vmatpush3.msra.mxu0 %v779_v5  ;;  %s1519_s18 = sshll.u32 %s2328_s16, 4  ;;  %s2397_s18 = int_to_ptr.vmem [resolvable:$true] %s1519_s18 }
  0x17   : > { %320 = vperm.xlu1 %1890, %v281_v1   ;;  %315 = vperm.xlu0 %1888, %v280_v2   ;;  %v283_v6 = vld [vmem:[%s2052_s17 + $0x18] sm:$0xff]  ;;  %v284_v10 = vld [vmem:[%s2052_s17 + $0x20] sm:$0xff]  ;;  %v285_v11 = vld [vmem:[%s2052_s17 + $0x28] sm:$0xff]  ;;  %v475_v39 = vsub.s32 0, %v474_v37  ;;  %v639_v40 = vsub.s32 1, %v474_v37  ;;  %s1893_s22 = scalar_lea.vmem %s2397_s18, 4096  ;;  %p1900_p0 = scmp.lt.s32.totalorder %s2397_s18, %s1898_s29 }
  0x18   : > { %1735 = vmatprep.subr.mxu0 %v778_v7  ;;  %v286_v12 = vld [vmem:[%s2052_s17 + $0x30] sm:$0xff]  ;;  %v287_v13 = vld [vmem:[%s2052_s17 + $0x38] sm:$0xff]  ;;  %v288_v14 = vld [vmem:[%s2052_s17 + $0x40] sm:$0xff]  ;;  %p1894_p11 = scmp.ne.s32.totalorder %s2397_s18, %s1893_s22  ;;  %p1901_p1 = scmp.lt.s32.totalorder %s1899_s8, %s1893_s22 }
  0x19   : > { %1736 = vmatpush3.msra.mxu0 %v778_v7  ;;  %v289_v15 = vld [vmem:[%s2052_s17 + $0x48] sm:$0xff]  ;;  %v290_v16 = vld [vmem:[%s2052_s17 + $0x50] sm:$0xff]  ;;  %v291_v17 = vld [vmem:[%s2052_s17 + $0x58] sm:$0xff]  ;;  %v2101_v45 = vrot.slane %v312_v41, %v475_v39  ;;  %v2103_v46 = vrot.slane %v312_v41, %v639_v40 }
  0x1a   : > { %1737 = vmatprep.subr.mxu0 %v777_v8  ;;  %v292_v18 = vld [vmem:[%s2052_s17 + $0x60] sm:$0xff]  ;;  %v293_v19 = vld [vmem:[%s2052_s17 + $0x68] sm:$0xff]  ;;  %v294_v20 = vld [vmem:[%s2052_s17 + $0x70] sm:$0xff]  ;;  %p1895_p12 = pnand %p1894_p11, %p2038_p5  ;;  %p1902_p2 = por %p1901_p1, %p1900_p0 }
  0x1b   : > { %1891 = vset.pattern.permute.xlu1 %v1956_v3  ;;  %1889 = vset.pattern.permute.xlu0 %v1956_v3  ;;  %v295_v21 = vld [vmem:[%s2052_s17 + $0x78] sm:$0xff]  ;;  %v296_v22 = vld [vmem:[%s2052_s17 + $0x80] sm:$0xff]  ;;  %v297_v23 = vld [vmem:[%s2052_s17 + $0x88] sm:$0xff] }
  0x1c   : > { %514 = vperm.xlu1 %1891, %v281_v1   ;;  %510 = vperm.xlu0 %1889, %v280_v2   ;;  %v298_v24 = vld [vmem:[%s2052_s17 + $0x90] sm:$0xff]  ;;  %v299_v25 = vld [vmem:[%s2052_s17 + $0x98] sm:$0xff]  ;;  %v300_v26 = vld [vmem:[%s2052_s17 + $0xa0] sm:$0xff]  ;;  %p1896_p13 = pneg %p1895_p12 }
  0x1d   : > { %1738 = vmatpush3.msra.mxu0 %v777_v8  ;;  %v301_v27 = vld [vmem:[%s2052_s17 + $0xa8] sm:$0xff]  ;;  %v302_v28 = vld [vmem:[%s2052_s17 + $0xb0] sm:$0xff]  ;;  %v303_v29 = vld [vmem:[%s2052_s17 + $0xb8] sm:$0xff] }
  0x1e   : > { %1739 = vmatprep.subr.mxu0 %v776_v9  ;;  %v304_v30 = vld [vmem:[%s2052_s17 + $0xc0] sm:$0xff]  ;;  %v305_v31 = vld [vmem:[%s2052_s17 + $0xc8] sm:$0xff]  ;;  %v306_v32 = vld [vmem:[%s2052_s17 + $0xd0] sm:$0xff]  ;;  %p1903_p3 = pnand %p1902_p2, %p1896_p13 }
  0x1f   : > { %1740 = vmatpush3.msra.mxu0 %v776_v9  ;;  %v307_v33 = vld [vmem:[%s2052_s17 + $0xd8] sm:$0xff]  ;;  %v308_v34 = vld [vmem:[%s2052_s17 + $0xe0] sm:$0xff]  ;;  %v309_v36 = vld [vmem:[%s2052_s17 + $0xe8] sm:$0xff] }
  0x20   : > { %1892 = vset.pattern.permute.xlu1 %v1955_v0  ;;  %518 = vperm.xlu0 %1889, %v282_v4   ;;  %v310_v38 = vld [vmem:[%s2052_s17 + $0xf0] sm:$0xff]  ;;  %v311_v42 = vld [vmem:[%s2052_s17 + $0xf8] sm:$0xff]  ;;  %v2112_v53 = vld [vmem:[%s2446_s2] ss:$0 sm:$0xff]  ;;  %s1660_s17 = sshll.u32 %s2021_s28, 12  ;;  %s2404_s28 = scalar_lea.sflag [#allocation3], %s270_s9 }
  0x21   : > { %325 = vperm.xlu1 %1892, %v282_v4   ;;  %s2395_s21 = scalar_lea.hbm %s2451_s7, %s1660_s17 }
  0x24   : > { %522 = vperm.xlu0 %1889, %v283_v6  }
  0x25   : > { %330 = vperm.xlu1 %1892, %v283_v6  }
  0x28   : > { %526 = vperm.xlu0 %1889, %v284_v10  }
  0x29   : > { %335 = vperm.xlu1 %1892, %v284_v10  }
  0x2c   : > { %530 = vperm.xlu0 %1889, %v285_v11  }
  0x2d   : > { %340 = vperm.xlu1 %1892, %v285_v11  }
  0x30   : > { %534 = vperm.xlu0 %1889, %v286_v12  }
  0x31   : > { %345 = vperm.xlu1 %1892, %v286_v12  }
  0x34   : > { %538 = vperm.xlu0 %1889, %v287_v13  }
  0x35   : > { %350 = vperm.xlu1 %1892, %v287_v13  }
  0x38   : > { %542 = vperm.xlu0 %1889, %v288_v14  }
  0x39   : > { %355 = vperm.xlu1 %1892, %v288_v14  }
  0x3c   : > { %546 = vperm.xlu0 %1889, %v289_v15  }
  0x3d   : > { %360 = vperm.xlu1 %1892, %v289_v15  }
  0x40   : > { %550 = vperm.xlu0 %1889, %v290_v16  }
  0x41   : > { %365 = vperm.xlu1 %1892, %v290_v16  }
  0x44   : > { %554 = vperm.xlu0 %1889, %v291_v17  }
  0x45   : > { %370 = vperm.xlu1 %1892, %v291_v17  }
  0x48   : > { %558 = vperm.xlu0 %1889, %v292_v18  }
  0x49   : > { %375 = vperm.xlu1 %1892, %v292_v18  }
  0x4c   : > { %562 = vperm.xlu0 %1889, %v293_v19  }
  0x4d   : > { %380 = vperm.xlu1 %1892, %v293_v19  }
  0x50   : > { %566 = vperm.xlu0 %1889, %v294_v20  }
  0x51   : > { %385 = vperm.xlu1 %1892, %v294_v20  }
  0x54   : > { %570 = vperm.xlu0 %1889, %v295_v21  }
  0x55   : > { %390 = vperm.xlu1 %1892, %v295_v21  }
  0x58   : > { %574 = vperm.xlu0 %1889, %v296_v22  }
  0x59   : > { %395 = vperm.xlu1 %1892, %v296_v22  }
  0x5c   : > { %578 = vperm.xlu0 %1889, %v297_v23  }
  0x5d   : > { %400 = vperm.xlu1 %1892, %v297_v23  }
  0x60   : > { %582 = vperm.xlu0 %1889, %v298_v24  }
  0x61   : > { %405 = vperm.xlu1 %1892, %v298_v24  }
  0x64   : > { %586 = vperm.xlu0 %1889, %v299_v25  }
  0x65   : > { %410 = vperm.xlu1 %1892, %v299_v25  }
  0x68   : > { %590 = vperm.xlu0 %1889, %v300_v26  }
  0x69   : > { %415 = vperm.xlu1 %1892, %v300_v26  }
  0x6c   : > { %594 = vperm.xlu0 %1889, %v301_v27  }
  0x6d   : > { %420 = vperm.xlu1 %1892, %v301_v27  }
  0x70   : > { %598 = vperm.xlu0 %1889, %v302_v28  }
  0x71   : > { %425 = vperm.xlu1 %1892, %v302_v28  }
  0x74   : > { %602 = vperm.xlu0 %1889, %v303_v29  }
  0x75   : > { %430 = vperm.xlu1 %1892, %v303_v29  }
  0x78   : > { %606 = vperm.xlu0 %1889, %v304_v30  }
  0x79   : > { %435 = vperm.xlu1 %1892, %v304_v30  }
  0x7c   : > { %610 = vperm.xlu0 %1889, %v305_v31  }
  0x7d   : > { %440 = vperm.xlu1 %1892, %v305_v31  }
  0x80   : > { %614 = vperm.xlu0 %1889, %v306_v32  }
  0x81   : > { %445 = vperm.xlu1 %1892, %v306_v32  }
  0x84   : > { %618 = vperm.xlu0 %1889, %v307_v33  }
  0x85   : > { %450 = vperm.xlu1 %1892, %v307_v33  }
  0x88   : > { %622 = vperm.xlu0 %1889, %v308_v34  }
  0x89   : > { %455 = vperm.xlu1 %1892, %v308_v34  }
  0x8c   : > { %626 = vperm.xlu0 %1889, %v309_v36  }
  0x8d   : > { %460 = vperm.xlu1 %1892, %v309_v36  }
  0x90   : > { %630 = vperm.xlu0 %1889, %v310_v38  }
  0x91   : > { %465 = vperm.xlu1 %1892, %v310_v38  }
  0x92   : > { %v321_v43 = vpop.permute.xlu1 %320  ;;  %v316_v44 = vpop.permute.xlu0 %315 }
  0x93   : > { %v478_v49 = vmul.f32 %v2101_v45, %v321_v43  ;;  %v477_v50 = vmul.f32 %v2101_v45, %v316_v44 }
  0x94   : > { %634 = vperm.xlu0 %1889, %v311_v42  }
  0x95   : > { %470 = vperm.xlu1 %1892, %v311_v42  }
  0x97   : > { %v515_v47 = vpop.permute.xlu1 %514  ;;  %v511_v48 = vpop.permute.xlu0 %510 }
  0x98   : > { %v642_v51 = vmul.f32 %v2103_v46, %v515_v47  ;;  %v641_v52 = vmul.f32 %v2103_v46, %v511_v48 }
  0x9a   : > { %v674_v54 = vadd.f32 %v642_v51, %v478_v49  ;;  %v673_v55 = vadd.f32 %v641_v52, %v477_v50 }
  0x9b   : > { %v519_v56 = vpop.permute.xlu0 %518 }
  0x9c   : > { %v713_v57 = vadd.f32 %v2112_v53, %v674_v54  ;;  %v643_v58 = vmul.f32 %v2103_v46, %v519_v56  ;;  %v326_v59 = vpop.permute.xlu1 %325  ;;  %v712_v60 = vadd.f32 %v2112_v53, %v673_v55 }
  0x9d   : > { %v479_v61 = vmul.f32 %v2101_v45, %v326_v59 }
  0x9e   : > { %v745_v62 = vmax.f32 %v713_v57, 0.0  ;;  %v744_v63 = vmax.f32 %v712_v60, 0.0 }
  0x9f   : > { %v675_v0 = vadd.f32 %v643_v58, %v479_v61  ;;  %v523_v1 = vpop.permute.xlu0 %522 }
  0xa0   : > { %v644_v2 = vmul.f32 %v2103_v46, %v523_v1  ;;  %v331_v3 = vpop.permute.xlu1 %330  ;;  %1741 = vmatprep.mubr.msk.f32.mxu0 %vm787_vm0, %v744_v63 }
  0xa1   : > { %v714_v4 = vadd.f32 %v2112_v53, %v675_v0  ;;  %v480_v5 = vmul.f32 %v2101_v45, %v331_v3  ;;  %1742 = vmatmul.mubr.msk.f32.vlgmr.msra.gmra.mxu0 %vm787_vm0, %v745_v62 }
  0xa3   : > { %v746_v6 = vmax.f32 %v714_v4, 0.0  ;;  %v676_v7 = vadd.f32 %v644_v2, %v480_v5  ;;  %v527_v8 = vpop.permute.xlu0 %526 }
  0xa4   : > { %v645_v9 = vmul.f32 %v2103_v46, %v527_v8  ;;  %v336_v10 = vpop.permute.xlu1 %335 }
  0xa5   : > { %v715_v11 = vadd.f32 %v2112_v53, %v676_v7  ;;  %v481_v12 = vmul.f32 %v2101_v45, %v336_v10  ;;  %1744 = vmatprep.mubr.msk.f32.mxu0 %vm787_vm0, %v746_v6 }
  0xa7   : > { %v747_v13 = vmax.f32 %v715_v11, 0.0  ;;  %v677_v14 = vadd.f32 %v645_v9, %v481_v12  ;;  %v531_v15 = vpop.permute.xlu0 %530 }
  0xa8   : > { %v646_v16 = vmul.f32 %v2103_v46, %v531_v15  ;;  %v341_v17 = vpop.permute.xlu1 %340 }
  0xa9   : > { %v716_v18 = vadd.f32 %v2112_v53, %v677_v14  ;;  %v482_v19 = vmul.f32 %v2101_v45, %v341_v17  ;;  %1745 = vmatmul.mubr.msk.f32.gmra.mxu0 %vm787_vm0, %v747_v13 }
  0xab   : > { %v748_v20 = vmax.f32 %v716_v18, 0.0  ;;  %v678_v21 = vadd.f32 %v646_v16, %v482_v19  ;;  %v535_v22 = vpop.permute.xlu0 %534 }
  0xac   : > { %v647_v23 = vmul.f32 %v2103_v46, %v535_v22  ;;  %v346_v24 = vpop.permute.xlu1 %345 }
  0xad   : > { %v717_v25 = vadd.f32 %v2112_v53, %v678_v21  ;;  %v483_v26 = vmul.f32 %v2101_v45, %v346_v24  ;;  %1747 = vmatprep.mubr.msk.f32.mxu0 %vm787_vm0, %v748_v20 }
  0xaf   : > { %v749_v27 = vmax.f32 %v717_v25, 0.0  ;;  %v679_v28 = vadd.f32 %v647_v23, %v483_v26  ;;  %v539_v29 = vpop.permute.xlu0 %538 }
  0xb0   : > { %v648_v30 = vmul.f32 %v2103_v46, %v539_v29  ;;  %v351_v31 = vpop.permute.xlu1 %350 }
  0xb1   : > { %v718_v32 = vadd.f32 %v2112_v53, %v679_v28  ;;  %v484_v33 = vmul.f32 %v2101_v45, %v351_v31  ;;  %1748 = vmatmul.mubr.msk.f32.gmra.mxu0 %vm787_vm0, %v749_v27 }
  0xb3   : > { %v750_v34 = vmax.f32 %v718_v32, 0.0  ;;  %v680_v35 = vadd.f32 %v648_v30, %v484_v33  ;;  %v543_v36 = vpop.permute.xlu0 %542 }
  0xb4   : > { %v649_v37 = vmul.f32 %v2103_v46, %v543_v36  ;;  %v356_v38 = vpop.permute.xlu1 %355 }
  0xb5   : > { %v719_v39 = vadd.f32 %v2112_v53, %v680_v35  ;;  %v485_v40 = vmul.f32 %v2101_v45, %v356_v38  ;;  %1750 = vmatprep.mubr.msk.f32.mxu0 %vm787_vm0, %v750_v34 }
  0xb7   : > { %v751_v41 = vmax.f32 %v719_v39, 0.0  ;;  %v681_v42 = vadd.f32 %v649_v37, %v485_v40  ;;  %v547_v43 = vpop.permute.xlu0 %546 }
  0xb8   : > { %v650_v44 = vmul.f32 %v2103_v46, %v547_v43  ;;  %v361_v47 = vpop.permute.xlu1 %360 }
  0xb9   : > { %v720_v48 = vadd.f32 %v2112_v53, %v681_v42  ;;  %v486_v49 = vmul.f32 %v2101_v45, %v361_v47  ;;  %1751 = vmatmul.mubr.msk.f32.gmra.mxu0 %vm787_vm0, %v751_v41 }
  0xbb   : > { %v752_v50 = vmax.f32 %v720_v48, 0.0  ;;  %v682_v51 = vadd.f32 %v650_v44, %v486_v49  ;;  %v551_v52 = vpop.permute.xlu0 %550 }
  0xbc   : > { %v651_v54 = vmul.f32 %v2103_v46, %v551_v52  ;;  %v366_v55 = vpop.permute.xlu1 %365 }
  0xbd   : > { %v721_v56 = vadd.f32 %v2112_v53, %v682_v51  ;;  %v487_v57 = vmul.f32 %v2101_v45, %v366_v55  ;;  %1753 = vmatprep.mubr.msk.f32.mxu0 %vm787_vm0, %v752_v50 }
  0xbf   : > { %v753_v58 = vmax.f32 %v721_v56, 0.0  ;;  %v683_v59 = vadd.f32 %v651_v54, %v487_v57  ;;  %v555_v60 = vpop.permute.xlu0 %554 }
  0xc0   : > { %v652_v61 = vmul.f32 %v2103_v46, %v555_v60  ;;  %v371_v62 = vpop.permute.xlu1 %370 }
  0xc1   : > { %v722_v63 = vadd.f32 %v2112_v53, %v683_v59  ;;  %v488_v0 = vmul.f32 %v2101_v45, %v371_v62  ;;  %1754 = vmatmul.mubr.msk.f32.gmra.mxu0 %vm787_vm0, %v753_v58  ;;  %v1144_v58 = vld [vmem:[%s2449_s5 + $0x18] sm:$0xff] }
  0xc2   : > { %1789 = vmatprep.subr.mxu1 %v1144_v58 }
  0xc3   : > { %v754_v1 = vmax.f32 %v722_v63, 0.0  ;;  %v684_v2 = vadd.f32 %v652_v61, %v488_v0  ;;  %v559_v3 = vpop.permute.xlu0 %558  ;;  %1790 = vmatpush3.msra.mxu1 %v1144_v58  ;;  %v1143_v61 = vld [vmem:[%s2449_s5 + $0x10] sm:$0xff] }
  0xc4   : > { %v653_v4 = vmul.f32 %v2103_v46, %v559_v3  ;;  %v376_v5 = vpop.permute.xlu1 %375  ;;  %1791 = vmatprep.subr.mxu1 %v1143_v61  ;;  %v1142_v3 = vld [vmem:[%s2449_s5 + $0x8] sm:$0xff] }
  0xc5   : > { %v723_v6 = vadd.f32 %v2112_v53, %v684_v2  ;;  %v489_v7 = vmul.f32 %v2101_v45, %v376_v5  ;;  %1756 = vmatprep.mubr.msk.f32.mxu0 %vm787_vm0, %v754_v1  ;;  %1792 = vmatpush3.msra.mxu1 %v1143_v61 }
  0xc6   : > { %1793 = vmatprep.subr.mxu1 %v1142_v3 }
  0xc7   : > { %v755_v8 = vmax.f32 %v723_v6, 0.0  ;;  %v685_v9 = vadd.f32 %v653_v4, %v489_v7  ;;  %v563_v10 = vpop.permute.xlu0 %562  ;;  %1794 = vmatpush3.msra.mxu1 %v1142_v3  ;;  %v1141_v6 = vld [vmem:[%s2449_s5] sm:$0xff] }
  0xc8   : > { %v654_v11 = vmul.f32 %v2103_v46, %v563_v10  ;;  %v381_v12 = vpop.permute.xlu1 %380  ;;  %1795 = vmatprep.subr.mxu1 %v1141_v6 }
  0xc9   : > { %v724_v13 = vadd.f32 %v2112_v53, %v685_v9  ;;  %v490_v14 = vmul.f32 %v2101_v45, %v381_v12  ;;  %1757 = vmatmul.mubr.msk.f32.gmra.mxu0 %vm787_vm0, %v755_v8  ;;  %1796 = vmatpush3.msra.mxu1 %v1141_v6 }
  0xcb   : > { %v756_v15 = vmax.f32 %v724_v13, 0.0  ;;  %v686_v16 = vadd.f32 %v654_v11, %v490_v14  ;;  %v567_v17 = vpop.permute.xlu0 %566 }
  0xcc   : > { %v655_v18 = vmul.f32 %v2103_v46, %v567_v17  ;;  %v386_v19 = vpop.permute.xlu1 %385 }
  0xcd   : > { %v725_v20 = vadd.f32 %v2112_v53, %v686_v16  ;;  %v491_v21 = vmul.f32 %v2101_v45, %v386_v19  ;;  %1759 = vmatprep.mubr.msk.f32.mxu0 %vm787_vm0, %v756_v15 }
  0xcf   : > { %v757_v22 = vmax.f32 %v725_v20, 0.0  ;;  %v687_v23 = vadd.f32 %v655_v18, %v491_v21  ;;  %v571_v24 = vpop.permute.xlu0 %570 }
  0xd0   : > { %v656_v25 = vmul.f32 %v2103_v46, %v571_v24  ;;  %v391_v26 = vpop.permute.xlu1 %390 }
  0xd1   : > { %v726_v27 = vadd.f32 %v2112_v53, %v687_v23  ;;  %v492_v28 = vmul.f32 %v2101_v45, %v391_v26  ;;  %1760 = vmatmul.mubr.msk.f32.gmra.mxu0 %vm787_vm0, %v757_v22 }
  0xd3   : > { %v758_v29 = vmax.f32 %v726_v27, 0.0  ;;  %v688_v30 = vadd.f32 %v656_v25, %v492_v28  ;;  %v575_v31 = vpop.permute.xlu0 %574 }
  0xd4   : > { %v657_v32 = vmul.f32 %v2103_v46, %v575_v31  ;;  %v396_v33 = vpop.permute.xlu1 %395 }
  0xd5   : > { %v727_v34 = vadd.f32 %v2112_v53, %v688_v30  ;;  %v493_v35 = vmul.f32 %v2101_v45, %v396_v33  ;;  %1762 = vmatprep.mubr.msk.f32.mxu0 %vm787_vm0, %v758_v29 }
  0xd7   : > { %v759_v36 = vmax.f32 %v727_v34, 0.0  ;;  %v689_v37 = vadd.f32 %v657_v32, %v493_v35  ;;  %v579_v38 = vpop.permute.xlu0 %578 }
  0xd8   : > { %v658_v39 = vmul.f32 %v2103_v46, %v579_v38  ;;  %v401_v40 = vpop.permute.xlu1 %400 }
  0xd9   : > { %v728_v41 = vadd.f32 %v2112_v53, %v689_v37  ;;  %v494_v42 = vmul.f32 %v2101_v45, %v401_v40  ;;  %1763 = vmatmul.mubr.msk.f32.gmra.mxu0 %vm787_vm0, %v759_v36 }
  0xdb   : > { %v760_v43 = vmax.f32 %v728_v41, 0.0  ;;  %v690_v44 = vadd.f32 %v658_v39, %v494_v42  ;;  %v583_v47 = vpop.permute.xlu0 %582 }
  0xdc   : > { %v659_v48 = vmul.f32 %v2103_v46, %v583_v47  ;;  %v406_v49 = vpop.permute.xlu1 %405 }
  0xdd   : > { %v729_v50 = vadd.f32 %v2112_v53, %v690_v44  ;;  %v495_v51 = vmul.f32 %v2101_v45, %v406_v49  ;;  %1765 = vmatprep.mubr.msk.f32.mxu0 %vm787_vm0, %v760_v43 }
  0xdf   : > { %v761_v52 = vmax.f32 %v729_v50, 0.0  ;;  %v691_v54 = vadd.f32 %v659_v48, %v495_v51  ;;  %v587_v55 = vpop.permute.xlu0 %586 }
  0xe0   : > { %v660_v56 = vmul.f32 %v2103_v46, %v587_v55  ;;  %v411_v57 = vpop.permute.xlu1 %410 }
  0xe1   : > { %v730_v59 = vadd.f32 %v2112_v53, %v691_v54  ;;  %v496_v60 = vmul.f32 %v2101_v45, %v411_v57  ;;  %1766 = vmatmul.mubr.msk.f32.gmra.mxu0 %vm787_vm0, %v761_v52 }
  0xe3   : > { %v762_v62 = vmax.f32 %v730_v59, 0.0  ;;  %v692_v63 = vadd.f32 %v660_v56, %v496_v60  ;;  %v591_v0 = vpop.permute.xlu0 %590 }
  0xe4   : > { %v661_v1 = vmul.f32 %v2103_v46, %v591_v0  ;;  %v416_v2 = vpop.permute.xlu1 %415 }
  0xe5   : > { %v731_v4 = vadd.f32 %v2112_v53, %v692_v63  ;;  %v497_v5 = vmul.f32 %v2101_v45, %v416_v2  ;;  %1768 = vmatprep.mubr.msk.f32.mxu0 %vm787_vm0, %v762_v62 }
  0xe7   : > { %v763_v7 = vmax.f32 %v731_v4, 0.0  ;;  %v693_v8 = vadd.f32 %v661_v1, %v497_v5  ;;  %v595_v9 = vpop.permute.xlu0 %594 }
  0xe8   : > { %v662_v10 = vmul.f32 %v2103_v46, %v595_v9  ;;  %v421_v11 = vpop.permute.xlu1 %420 }
  0xe9   : > { %v732_v12 = vadd.f32 %v2112_v53, %v693_v8  ;;  %v498_v13 = vmul.f32 %v2101_v45, %v421_v11  ;;  %1769 = vmatmul.mubr.msk.f32.gmra.mxu0 %vm787_vm0, %v763_v7 }
  0xeb   : > { %v764_v14 = vmax.f32 %v732_v12, 0.0  ;;  %v694_v15 = vadd.f32 %v662_v10, %v498_v13  ;;  %v599_v16 = vpop.permute.xlu0 %598 }
  0xec   : > { %v663_v17 = vmul.f32 %v2103_v46, %v599_v16  ;;  %v426_v18 = vpop.permute.xlu1 %425 }
  0xed   : > { %v733_v19 = vadd.f32 %v2112_v53, %v694_v15  ;;  %v499_v20 = vmul.f32 %v2101_v45, %v426_v18  ;;  %1771 = vmatprep.mubr.msk.f32.mxu0 %vm787_vm0, %v764_v14 }
  0xef   : > { %v765_v21 = vmax.f32 %v733_v19, 0.0  ;;  %v695_v22 = vadd.f32 %v663_v17, %v499_v20  ;;  %v603_v23 = vpop.permute.xlu0 %602 }
  0xf0   : > { %v664_v24 = vmul.f32 %v2103_v46, %v603_v23  ;;  %v431_v25 = vpop.permute.xlu1 %430 }
  0xf1   : > { %v734_v26 = vadd.f32 %v2112_v53, %v695_v22  ;;  %v500_v27 = vmul.f32 %v2101_v45, %v431_v25  ;;  %1772 = vmatmul.mubr.msk.f32.gmra.mxu0 %vm787_vm0, %v765_v21 }
  0xf3   : > { %v766_v28 = vmax.f32 %v734_v26, 0.0  ;;  %v696_v29 = vadd.f32 %v664_v24, %v500_v27  ;;  %v607_v30 = vpop.permute.xlu0 %606 }
  0xf4   : > { %v665_v31 = vmul.f32 %v2103_v46, %v607_v30  ;;  %v436_v32 = vpop.permute.xlu1 %435 }
  0xf5   : > { %v735_v33 = vadd.f32 %v2112_v53, %v696_v29  ;;  %v501_v34 = vmul.f32 %v2101_v45, %v436_v32  ;;  %1774 = vmatprep.mubr.msk.f32.mxu0 %vm787_vm0, %v766_v28 }
  0xf7   : > { %v767_v35 = vmax.f32 %v735_v33, 0.0  ;;  %v697_v36 = vadd.f32 %v665_v31, %v501_v34  ;;  %v611_v37 = vpop.permute.xlu0 %610 }
  0xf8   : > { %v666_v38 = vmul.f32 %v2103_v46, %v611_v37  ;;  %v441_v39 = vpop.permute.xlu1 %440 }
  0xf9   : > { %v736_v40 = vadd.f32 %v2112_v53, %v697_v36  ;;  %v502_v41 = vmul.f32 %v2101_v45, %v441_v39  ;;  %1775 = vmatmul.mubr.msk.f32.gmra.mxu0 %vm787_vm0, %v767_v35 }
  0xfb   : > { %v768_v42 = vmax.f32 %v736_v40, 0.0  ;;  %v698_v43 = vadd.f32 %v666_v38, %v502_v41  ;;  %v615_v44 = vpop.permute.xlu0 %614 }
  0xfc   : > { %v667_v47 = vmul.f32 %v2103_v46, %v615_v44  ;;  %v446_v48 = vpop.permute.xlu1 %445 }
  0xfd   : > { %v737_v49 = vadd.f32 %v2112_v53, %v698_v43  ;;  %v503_v50 = vmul.f32 %v2101_v45, %v446_v48  ;;  %1777 = vmatprep.mubr.msk.f32.mxu0 %vm787_vm0, %v768_v42 }
  0xff   : > { %v769_v51 = vmax.f32 %v737_v49, 0.0  ;;  %v699_v52 = vadd.f32 %v667_v47, %v503_v50  ;;  %v619_v54 = vpop.permute.xlu0 %618 }
 0x100   : > { %v668_v55 = vmul.f32 %v2103_v46, %v619_v54  ;;  %v451_v56 = vpop.permute.xlu1 %450 }
 0x101   : > { %v738_v57 = vadd.f32 %v2112_v53, %v699_v52  ;;  %v504_v58 = vmul.f32 %v2101_v45, %v451_v56  ;;  %1778 = vmatmul.mubr.msk.f32.gmra.mxu0 %vm787_vm0, %v769_v51 }
 0x103   : > { %v770_v59 = vmax.f32 %v738_v57, 0.0  ;;  %v700_v60 = vadd.f32 %v668_v55, %v504_v58  ;;  %v623_v61 = vpop.permute.xlu0 %622 }
 0x104   : > { %v669_v62 = vmul.f32 %v2103_v46, %v623_v61  ;;  %v456_v63 = vpop.permute.xlu1 %455 }
 0x105   : > { %v739_v0 = vadd.f32 %v2112_v53, %v700_v60  ;;  %v505_v1 = vmul.f32 %v2101_v45, %v456_v63  ;;  %1780 = vmatprep.mubr.msk.f32.mxu0 %vm787_vm0, %v770_v59 }
 0x107   : > { %v771_v2 = vmax.f32 %v739_v0, 0.0  ;;  %v701_v3 = vadd.f32 %v669_v62, %v505_v1  ;;  %v627_v4 = vpop.permute.xlu0 %626 }
 0x108   : > { %v670_v5 = vmul.f32 %v2103_v46, %v627_v4  ;;  %v461_v6 = vpop.permute.xlu1 %460 }
 0x109   : > { %v740_v7 = vadd.f32 %v2112_v53, %v701_v3  ;;  %v506_v8 = vmul.f32 %v2101_v45, %v461_v6  ;;  %1781 = vmatmul.mubr.msk.f32.gmra.mxu0 %vm787_vm0, %v771_v2 }
 0x10b   : > { %v772_v9 = vmax.f32 %v740_v7, 0.0  ;;  %v702_v10 = vadd.f32 %v670_v5, %v506_v8  ;;  %v631_v11 = vpop.permute.xlu0 %630 }
 0x10c   : > { %v671_v12 = vmul.f32 %v2103_v46, %v631_v11  ;;  %v466_v13 = vpop.permute.xlu1 %465 }
 0x10d   : > { %v741_v14 = vadd.f32 %v2112_v53, %v702_v10  ;;  %v507_v15 = vmul.f32 %v2101_v45, %v466_v13  ;;  %1783 = vmatprep.mubr.msk.f32.mxu0 %vm787_vm0, %v772_v9 }
 0x10f   : > { %v773_v16 = vmax.f32 %v741_v14, 0.0  ;;  %v703_v17 = vadd.f32 %v671_v12, %v507_v15  ;;  %v635_v18 = vpop.permute.xlu0 %634 }
 0x110   : > { %v672_v19 = vmul.f32 %v2103_v46, %v635_v18  ;;  %v471_v20 = vpop.permute.xlu1 %470  ;;  %v2253_v46 = vld [vmem:[%s2448_s4] ss:$0 sm:$0xff] }
 0x111   : > { %v742_v21 = vadd.f32 %v2112_v53, %v703_v17  ;;  %v508_v22 = vmul.f32 %v2101_v45, %v471_v20  ;;  %1784 = vmatmul.mubr.msk.f32.gmra.mxu0 %vm787_vm0, %v773_v16 }
 0x113   : > { %v774_v23 = vmax.f32 %v742_v21, 0.0  ;;  %v704_v24 = vadd.f32 %v672_v19, %v508_v22 }
 0x115   : > { %v743_v25 = vadd.f32 %v2112_v53, %v704_v24  ;;  %1786 = vmatprep.mubr.msk.f32.mxu0 %vm787_vm0, %v774_v23 }
 0x117   : > { %v775_v26 = vmax.f32 %v743_v25, 0.0 }
 0x119   : > { %1787 = vmatmul.mubr.msk.f32.gmra.mxu0 %vm787_vm0, %v775_v26 }
 0x161   : > { %v1743_v27 = vpop.f32.mrf.mxu0 }
 0x162   : > { %v956_v28 = vadd.f32 %v1743_v27, %v2253_v46 }
 0x163   : > { %v950_v45 = vpop.f32.mrf.mxu0 }
 0x164   : > { %v951_v29 = vadd.f32 %v2253_v46, %v950_v45  ;;  %v1110_v31 = vmax.f32 %v956_v28, 0.0 }
 0x166   : > { %v1109_v30 = vmax.f32 %v951_v29, 0.0 }
 0x168   : > { %1797 = vmatprep.mubr.msk.f32.mxu1 %vm787_vm0, %v1109_v30 }
 0x169   : > { %v1746_v53 = vpop.f32.mrf.mxu0  ;;  %1798 = vmatmul.mubr.msk.f32.vlgmr.msra.gmra.mxu1 %vm787_vm0, %v1110_v31 }
 0x16a   : > { %v966_v32 = vadd.f32 %v1746_v53, %v2253_v46 }
 0x16b   : > { %v960_v33 = vpop.f32.mrf.mxu0 }
 0x16c   : > { %v961_v34 = vadd.f32 %v2253_v46, %v960_v33  ;;  %v1112_v36 = vmax.f32 %v966_v32, 0.0 }
 0x16e   : > { %v1111_v35 = vmax.f32 %v961_v34, 0.0 }
 0x170   : > { %1800 = vmatprep.mubr.msk.f32.mxu1 %vm787_vm0, %v1111_v35 }
 0x171   : > { %v1749_v37 = vpop.f32.mrf.mxu0  ;;  %1801 = vmatmul.mubr.msk.f32.gmra.mxu1 %vm787_vm0, %v1112_v36 }
 0x172   : > { %v976_v38 = vadd.f32 %v1749_v37, %v2253_v46 }
 0x173   : > { %v970_v39 = vpop.f32.mrf.mxu0 }
 0x174   : > { %v971_v40 = vadd.f32 %v2253_v46, %v970_v39  ;;  %v1114_v42 = vmax.f32 %v976_v38, 0.0 }
 0x176   : > { %v1113_v41 = vmax.f32 %v971_v40, 0.0 }
 0x178   : > { %1803 = vmatprep.mubr.msk.f32.mxu1 %vm787_vm0, %v1113_v41 }
 0x179   : > { %v1752_v43 = vpop.f32.mrf.mxu0  ;;  %1804 = vmatmul.mubr.msk.f32.gmra.mxu1 %vm787_vm0, %v1114_v42 }
 0x17a   : > { %v986_v44 = vadd.f32 %v1752_v43, %v2253_v46 }
 0x17b   : > { %v980_v47 = vpop.f32.mrf.mxu0 }
 0x17c   : > { %v981_v48 = vadd.f32 %v2253_v46, %v980_v47  ;;  %v1116_v50 = vmax.f32 %v986_v44, 0.0 }
 0x17e   : > { %v1115_v49 = vmax.f32 %v981_v48, 0.0 }
 0x180   : > { %1806 = vmatprep.mubr.msk.f32.mxu1 %vm787_vm0, %v1115_v49 }
 0x181   : > { %v1755_v51 = vpop.f32.mrf.mxu0  ;;  %1807 = vmatmul.mubr.msk.f32.gmra.mxu1 %vm787_vm0, %v1116_v50 }
 0x182   : > { %v996_v52 = vadd.f32 %v1755_v51, %v2253_v46 }
 0x183   : > { %v990_v54 = vpop.f32.mrf.mxu0 }
 0x184   : > { %v991_v55 = vadd.f32 %v2253_v46, %v990_v54  ;;  %v1118_v57 = vmax.f32 %v996_v52, 0.0 }
 0x186   : > { %v1117_v56 = vmax.f32 %v991_v55, 0.0 }
 0x188   : > { %1809 = vmatprep.mubr.msk.f32.mxu1 %vm787_vm0, %v1117_v56 }
 0x189   : > { %v1758_v58 = vpop.f32.mrf.mxu0  ;;  %1810 = vmatmul.mubr.msk.f32.gmra.mxu1 %vm787_vm0, %v1118_v57 }
 0x18a   : > { %v1006_v59 = vadd.f32 %v1758_v58, %v2253_v46 }
 0x18b   : > { %v1000_v60 = vpop.f32.mrf.mxu0 }
 0x18c   : > { %v1001_v61 = vadd.f32 %v2253_v46, %v1000_v60  ;;  %v1120_v63 = vmax.f32 %v1006_v59, 0.0 }
 0x18e   : > { %v1119_v62 = vmax.f32 %v1001_v61, 0.0  ;;  %v2325_v61 = vld [vmem:[%s2450_s6] ss:$0 sm:$0xff] }
 0x190   : > { %1812 = vmatprep.mubr.msk.f32.mxu1 %vm787_vm0, %v1119_v62 }
 0x191   : > { %v1761_v0 = vpop.f32.mrf.mxu0  ;;  %1813 = vmatmul.mubr.msk.f32.gmra.mxu1 %vm787_vm0, %v1120_v63 }
 0x192   : > { %v1016_v1 = vadd.f32 %v1761_v0, %v2253_v46 }
 0x193   : > { %v1010_v2 = vpop.f32.mrf.mxu0 }
 0x194   : > { %v1011_v3 = vadd.f32 %v2253_v46, %v1010_v2  ;;  %v1122_v5 = vmax.f32 %v1016_v1, 0.0 }
 0x196   : > { %v1121_v4 = vmax.f32 %v1011_v3, 0.0 }
 0x198   : > { %1815 = vmatprep.mubr.msk.f32.mxu1 %vm787_vm0, %v1121_v4 }
 0x199   : > { %v1764_v6 = vpop.f32.mrf.mxu0  ;;  %1816 = vmatmul.mubr.msk.f32.gmra.mxu1 %vm787_vm0, %v1122_v5 }
 0x19a   : > { %v1026_v7 = vadd.f32 %v1764_v6, %v2253_v46 }
 0x19b   : > { %v1020_v8 = vpop.f32.mrf.mxu0 }
 0x19c   : > { %v1021_v9 = vadd.f32 %v2253_v46, %v1020_v8  ;;  %v1124_v11 = vmax.f32 %v1026_v7, 0.0 }
 0x19e   : > { %v1123_v10 = vmax.f32 %v1021_v9, 0.0 }
 0x1a0   : > { %1818 = vmatprep.mubr.msk.f32.mxu1 %vm787_vm0, %v1123_v10 }
 0x1a1   : > { %v1767_v12 = vpop.f32.mrf.mxu0  ;;  %1819 = vmatmul.mubr.msk.f32.gmra.mxu1 %vm787_vm0, %v1124_v11 }
 0x1a2   : > { %v1036_v13 = vadd.f32 %v1767_v12, %v2253_v46 }
 0x1a3   : > { %v1030_v14 = vpop.f32.mrf.mxu0 }
 0x1a4   : > { %v1031_v15 = vadd.f32 %v2253_v46, %v1030_v14  ;;  %v1126_v17 = vmax.f32 %v1036_v13, 0.0 }
 0x1a6   : > { %v1125_v16 = vmax.f32 %v1031_v15, 0.0 }
 0x1a8   : > { %1821 = vmatprep.mubr.msk.f32.mxu1 %vm787_vm0, %v1125_v16 }
 0x1a9   : > { %v1770_v18 = vpop.f32.mrf.mxu0  ;;  %1822 = vmatmul.mubr.msk.f32.gmra.mxu1 %vm787_vm0, %v1126_v17 }
 0x1aa   : > { %v1046_v19 = vadd.f32 %v1770_v18, %v2253_v46 }
 0x1ab   : > { %v1040_v20 = vpop.f32.mrf.mxu0 }
 0x1ac   : > { %v1041_v21 = vadd.f32 %v2253_v46, %v1040_v20  ;;  %v1128_v23 = vmax.f32 %v1046_v19, 0.0 }
 0x1ae   : > { %v1127_v22 = vmax.f32 %v1041_v21, 0.0 }
 0x1b0   : > { %1824 = vmatprep.mubr.msk.f32.mxu1 %vm787_vm0, %v1127_v22 }
 0x1b1   : > { %v1773_v24 = vpop.f32.mrf.mxu0  ;;  %1825 = vmatmul.mubr.msk.f32.gmra.mxu1 %vm787_vm0, %v1128_v23 }
 0x1b2   : > { %v1056_v25 = vadd.f32 %v1773_v24, %v2253_v46 }
 0x1b3   : > { %v1050_v26 = vpop.f32.mrf.mxu0 }
 0x1b4   : > { %v1051_v27 = vadd.f32 %v2253_v46, %v1050_v26  ;;  %v1130_v45 = vmax.f32 %v1056_v25, 0.0 }
 0x1b6   : > { %v1129_v28 = vmax.f32 %v1051_v27, 0.0 }
 0x1b8   : > { %1827 = vmatprep.mubr.msk.f32.mxu1 %vm787_vm0, %v1129_v28 }
 0x1b9   : > { %v1776_v29 = vpop.f32.mrf.mxu0  ;;  %1828 = vmatmul.mubr.msk.f32.gmra.mxu1 %vm787_vm0, %v1130_v45 }
 0x1ba   : > { %v1066_v30 = vadd.f32 %v1776_v29, %v2253_v46 }
 0x1bb   : > { %v1060_v31 = vpop.f32.mrf.mxu0 }
 0x1bc   : > { %v1061_v53 = vadd.f32 %v2253_v46, %v1060_v31  ;;  %v1132_v33 = vmax.f32 %v1066_v30, 0.0 }
 0x1be   : > { %v1131_v32 = vmax.f32 %v1061_v53, 0.0 }
 0x1c0   : > { %1830 = vmatprep.mubr.msk.f32.mxu1 %vm787_vm0, %v1131_v32 }
 0x1c1   : > { %v1779_v34 = vpop.f32.mrf.mxu0  ;;  %1831 = vmatmul.mubr.msk.f32.gmra.mxu1 %vm787_vm0, %v1132_v33 }
 0x1c2   : > { %v1076_v35 = vadd.f32 %v1779_v34, %v2253_v46 }
 0x1c3   : > { %v1070_v36 = vpop.f32.mrf.mxu0 }
 0x1c4   : > { %v1071_v37 = vadd.f32 %v2253_v46, %v1070_v36  ;;  %v1134_v39 = vmax.f32 %v1076_v35, 0.0 }
 0x1c6   : > { %v1133_v38 = vmax.f32 %v1071_v37, 0.0 }
 0x1c8   : > { %1833 = vmatprep.mubr.msk.f32.mxu1 %vm787_vm0, %v1133_v38 }
 0x1c9   : > { %v1782_v40 = vpop.f32.mrf.mxu0  ;;  %1834 = vmatmul.mubr.msk.f32.gmra.mxu1 %vm787_vm0, %v1134_v39 }
 0x1ca   : > { %v1086_v41 = vadd.f32 %v1782_v40, %v2253_v46 }
 0x1cb   : > { %v1080_v42 = vpop.f32.mrf.mxu0 }
 0x1cc   : > { %v1081_v43 = vadd.f32 %v2253_v46, %v1080_v42  ;;  %v1136_v47 = vmax.f32 %v1086_v41, 0.0 }
 0x1ce   : > { %v1135_v44 = vmax.f32 %v1081_v43, 0.0 }
 0x1d0   : > { %1836 = vmatprep.mubr.msk.f32.mxu1 %vm787_vm0, %v1135_v44 }
 0x1d1   : > { %v1785_v48 = vpop.f32.mrf.mxu0  ;;  %1837 = vmatmul.mubr.msk.f32.gmra.mxu1 %vm787_vm0, %v1136_v47 }
 0x1d2   : > { %v1096_v49 = vadd.f32 %v1785_v48, %v2253_v46 }
 0x1d3   : > { %v1090_v50 = vpop.f32.mrf.mxu0 }
 0x1d4   : > { %v1091_v51 = vadd.f32 %v2253_v46, %v1090_v50  ;;  %v1138_v54 = vmax.f32 %v1096_v49, 0.0 }
 0x1d6   : > { %v1137_v52 = vmax.f32 %v1091_v51, 0.0 }
 0x1d8   : > { %1839 = vmatprep.mubr.msk.f32.mxu1 %vm787_vm0, %v1137_v52 }
 0x1d9   : > { %v1788_v55 = vpop.f32.mrf.mxu0  ;;  %1840 = vmatmul.mubr.msk.f32.gmra.mxu1 %vm787_vm0, %v1138_v54 }
 0x1da   : > { %v1106_v56 = vadd.f32 %v1788_v55, %v2253_v46 }
 0x1db   : > { %v1100_v57 = vpop.f32.mrf.mxu0 }
 0x1dc   : > { %v1101_v58 = vadd.f32 %v2253_v46, %v1100_v57  ;;  %v1140_v60 = vmax.f32 %v1106_v56, 0.0 }
 0x1de   : > { %v1139_v59 = vmax.f32 %v1101_v58, 0.0 }
 0x1e0   : > { %1842 = vmatprep.mubr.msk.f32.mxu1 %vm787_vm0, %v1139_v59 }
 0x1e1   : > { %1843 = vmatmul.mubr.msk.f32.gmra.mxu1 %vm787_vm0, %v1140_v60 }
 0x229   : > { %v1799_v62 = vpop.f32.mrf.mxu1 }
 0x22a   : > { %v1320_v63 = vadd.f32 %v1799_v62, %v2325_v61 }
 0x22b   : > { %v1314_v0 = vpop.f32.mrf.mxu1 }
 0x22c   : > { %1474 = vst [vmem:[%s2328_s16 + $0x8] sm:$0xff] %v1320_v63  ;;  %v1315_v46 = vadd.f32 %v2325_v61, %v1314_v0 }
 0x22e   : > { %1473 = vst [vmem:[%s2328_s16] sm:$0xff] %v1315_v46 }
 0x231   : > { %v1802_v1 = vpop.f32.mrf.mxu1 }
 0x232   : > { %v1330_v2 = vadd.f32 %v1802_v1, %v2325_v61 }
 0x233   : > { %v1324_v3 = vpop.f32.mrf.mxu1 }
 0x234   : > { %1476 = vst [vmem:[%s2328_s16 + $0x18] sm:$0xff] %v1330_v2  ;;  %v1325_v4 = vadd.f32 %v2325_v61, %v1324_v3 }
 0x236   : > { %1475 = vst [vmem:[%s2328_s16 + $0x10] sm:$0xff] %v1325_v4 }
 0x239   : > { %v1805_v5 = vpop.f32.mrf.mxu1 }
 0x23a   : > { %v1340_v6 = vadd.f32 %v1805_v5, %v2325_v61 }
 0x23b   : > { %v1334_v7 = vpop.f32.mrf.mxu1 }
 0x23c   : > { %1478 = vst [vmem:[%s2328_s16 + $0x28] sm:$0xff] %v1340_v6  ;;  %v1335_v8 = vadd.f32 %v2325_v61, %v1334_v7 }
 0x23e   : > { %1477 = vst [vmem:[%s2328_s16 + $0x20] sm:$0xff] %v1335_v8 }
 0x241   : > { %v1808_v9 = vpop.f32.mrf.mxu1 }
 0x242   : > { %v1350_v10 = vadd.f32 %v1808_v9, %v2325_v61 }
 0x243   : > { %v1344_v11 = vpop.f32.mrf.mxu1 }
 0x244   : > { %1480 = vst [vmem:[%s2328_s16 + $0x38] sm:$0xff] %v1350_v10  ;;  %v1345_v12 = vadd.f32 %v2325_v61, %v1344_v11 }
 0x246   : > { %1479 = vst [vmem:[%s2328_s16 + $0x30] sm:$0xff] %v1345_v12 }
 0x249   : > { %v1811_v13 = vpop.f32.mrf.mxu1 }
 0x24a   : > { %v1360_v14 = vadd.f32 %v1811_v13, %v2325_v61 }
 0x24b   : > { %v1354_v15 = vpop.f32.mrf.mxu1 }
 0x24c   : > { %1482 = vst [vmem:[%s2328_s16 + $0x48] sm:$0xff] %v1360_v14  ;;  %v1355_v16 = vadd.f32 %v2325_v61, %v1354_v15 }
 0x24e   : > { %1481 = vst [vmem:[%s2328_s16 + $0x40] sm:$0xff] %v1355_v16 }
 0x251   : > { %v1814_v17 = vpop.f32.mrf.mxu1 }
 0x252   : > { %v1370_v18 = vadd.f32 %v1814_v17, %v2325_v61 }
 0x253   : > { %v1364_v19 = vpop.f32.mrf.mxu1 }
 0x254   : > { %1484 = vst [vmem:[%s2328_s16 + $0x58] sm:$0xff] %v1370_v18  ;;  %v1365_v20 = vadd.f32 %v2325_v61, %v1364_v19 }
 0x256   : > { %1483 = vst [vmem:[%s2328_s16 + $0x50] sm:$0xff] %v1365_v20 }
 0x259   : > { %v1817_v21 = vpop.f32.mrf.mxu1 }
 0x25a   : > { %v1380_v22 = vadd.f32 %v1817_v21, %v2325_v61 }
 0x25b   : > { %v1374_v23 = vpop.f32.mrf.mxu1 }
 0x25c   : > { %1486 = vst [vmem:[%s2328_s16 + $0x68] sm:$0xff] %v1380_v22  ;;  %v1375_v24 = vadd.f32 %v2325_v61, %v1374_v23 }
 0x25e   : > { %1485 = vst [vmem:[%s2328_s16 + $0x60] sm:$0xff] %v1375_v24 }
 0x261   : > { %v1820_v25 = vpop.f32.mrf.mxu1 }
 0x262   : > { %v1390_v26 = vadd.f32 %v1820_v25, %v2325_v61 }
 0x263   : > { %v1384_v27 = vpop.f32.mrf.mxu1 }
 0x264   : > { %1488 = vst [vmem:[%s2328_s16 + $0x78] sm:$0xff] %v1390_v26  ;;  %v1385_v28 = vadd.f32 %v2325_v61, %v1384_v27 }
 0x266   : > { %1487 = vst [vmem:[%s2328_s16 + $0x70] sm:$0xff] %v1385_v28 }
 0x269   : > { %v1823_v45 = vpop.f32.mrf.mxu1 }
 0x26a   : > { %v1400_v29 = vadd.f32 %v1823_v45, %v2325_v61 }
 0x26b   : > { %v1394_v30 = vpop.f32.mrf.mxu1 }
 0x26c   : > { %1490 = vst [vmem:[%s2328_s16 + $0x88] sm:$0xff] %v1400_v29  ;;  %v1395_v31 = vadd.f32 %v2325_v61, %v1394_v30 }
 0x26e   : > { %1489 = vst [vmem:[%s2328_s16 + $0x80] sm:$0xff] %v1395_v31 }
 0x271   : > { %v1826_v53 = vpop.f32.mrf.mxu1 }
 0x272   : > { %v1410_v32 = vadd.f32 %v1826_v53, %v2325_v61 }
 0x273   : > { %v1404_v33 = vpop.f32.mrf.mxu1 }
 0x274   : > { %1492 = vst [vmem:[%s2328_s16 + $0x98] sm:$0xff] %v1410_v32  ;;  %v1405_v34 = vadd.f32 %v2325_v61, %v1404_v33 }
 0x276   : > { %1491 = vst [vmem:[%s2328_s16 + $0x90] sm:$0xff] %v1405_v34 }
 0x279   : > { %v1829_v35 = vpop.f32.mrf.mxu1 }
 0x27a   : > { %v1420_v36 = vadd.f32 %v1829_v35, %v2325_v61 }
 0x27b   : > { %v1414_v37 = vpop.f32.mrf.mxu1 }
 0x27c   : > { %1494 = vst [vmem:[%s2328_s16 + $0xa8] sm:$0xff] %v1420_v36  ;;  %v1415_v38 = vadd.f32 %v2325_v61, %v1414_v37 }
 0x27e   : > { %1493 = vst [vmem:[%s2328_s16 + $0xa0] sm:$0xff] %v1415_v38 }
 0x281   : > { %v1832_v39 = vpop.f32.mrf.mxu1 }
 0x282   : > { %v1430_v40 = vadd.f32 %v1832_v39, %v2325_v61 }
 0x283   : > { %v1424_v41 = vpop.f32.mrf.mxu1 }
 0x284   : > { %1496 = vst [vmem:[%s2328_s16 + $0xb8] sm:$0xff] %v1430_v40  ;;  %v1425_v42 = vadd.f32 %v2325_v61, %v1424_v41 }
 0x286   : > { %1495 = vst [vmem:[%s2328_s16 + $0xb0] sm:$0xff] %v1425_v42 }
 0x289   : > { %v1835_v43 = vpop.f32.mrf.mxu1 }
 0x28a   : > { %v1440_v44 = vadd.f32 %v1835_v43, %v2325_v61 }
 0x28b   : > { %v1434_v47 = vpop.f32.mrf.mxu1 }
 0x28c   : > { %1498 = vst [vmem:[%s2328_s16 + $0xc8] sm:$0xff] %v1440_v44  ;;  %v1435_v48 = vadd.f32 %v2325_v61, %v1434_v47 }
 0x28e   : > { %1497 = vst [vmem:[%s2328_s16 + $0xc0] sm:$0xff] %v1435_v48 }
 0x291   : > { %v1838_v49 = vpop.f32.mrf.mxu1 }
 0x292   : > { %v1450_v50 = vadd.f32 %v1838_v49, %v2325_v61 }
 0x293   : > { %v1444_v51 = vpop.f32.mrf.mxu1 }
 0x294   : > { %1500 = vst [vmem:[%s2328_s16 + $0xd8] sm:$0xff] %v1450_v50  ;;  %v1445_v52 = vadd.f32 %v2325_v61, %v1444_v51 }
 0x296   : > { %1499 = vst [vmem:[%s2328_s16 + $0xd0] sm:$0xff] %v1445_v52 }
 0x299   : > { %v1841_v54 = vpop.f32.mrf.mxu1 }
 0x29a   : > { %v1460_v55 = vadd.f32 %v1841_v54, %v2325_v61 }
 0x29b   : > { %v1454_v56 = vpop.f32.mrf.mxu1 }
 0x29c   : > { %1502 = vst [vmem:[%s2328_s16 + $0xe8] sm:$0xff] %v1460_v55  ;;  %v1455_v57 = vadd.f32 %v2325_v61, %v1454_v56 }
 0x29e   : > { %1501 = vst [vmem:[%s2328_s16 + $0xe0] sm:$0xff] %v1455_v57 }
 0x2a1   : > { %v1844_v58 = vpop.f32.mrf.mxu1 }
 0x2a2   : > { %v1470_v59 = vadd.f32 %v1844_v58, %v2325_v61 }
 0x2a3   : > { %v1464_v60 = vpop.f32.mrf.mxu1 }
 0x2a4   : > { %1504 = vst [vmem:[%s2328_s16 + $0xf8] sm:$0xff] %v1470_v59  ;;  %v1465_v62 = vadd.f32 %v2325_v61, %v1464_v60 }
 0x2a6   : > { %1503 = vst [vmem:[%s2328_s16 + $0xf0] sm:$0xff] %v1465_v62 }
 0x2a7   : > { %1906 = shalt.err (!%p1903_p3)
}
 0x2a8   : > { %s1907_s9 = scalar_lea.hbm %s2395_s21, 4096  ;;  %s1911_s15 = scalar_lea.hbm %s2451_s7, 16384 }
 0x2a9   : > { %p1908_p4 = scmp.ne.s32.totalorder %s2395_s21, %s1907_s9  ;;  %p1912_p9 = scmp.lt.s32.totalorder %s2395_s21, %s2451_s7 }
 0x2aa   : > { %p1913_p10 = scmp.lt.s32.totalorder %s1911_s15, %s1907_s9 }
 0x2ab   : > { %p1909_p7 = pnand %p1908_p4, %p2038_p5 }
 0x2ac   : > { %p1914_p11 = por %p1913_p10, %p1912_p9 }
 0x2ad   : > { %p1910_p8 = pneg %p1909_p7 }
 0x2af   : > { %p1915_p12 = pnand %p1914_p11, %p1910_p8 }
 0x2b1   : > { %1918 = shalt.err (!%p1915_p12)
}
 0x2b2   : > { %s1958_s19 = smov 128   ;;  %s1959_s20 = smov 8  }
 0x2b3   : > { %1845 = dma.vmem_to_hbm [thread:$0]  (%p2038_p5), %s2397_s18, 4096, %s2395_s21, %s2404_s28, %s1958_s19, %s1958_s19, %s1959_s20  }
 0x2b4 PF: > { %p1851_p13 = scmp.ge.s32.totalorder %s1953_s27, 2  ;;  %s1534_s22 = sand.u32 1, %s1941_s24  }
 0x2b5   : > { %s1535_s23 = scalar_lea.sflag [#allocation3], %s1534_s22 }
 0x2b6   : > { %p1848_p0 = pnand %p1851_p13, %p2042_p6 }
 0x2b8   : > { %p1849_p1 = pneg %p1848_p0 }
 0x2ba   : > { %1936 = dma.done.wait (%p1849_p1), %s1535_s23, 4096  }
 0x2bb   : > { %1938 = vsyncadd (%p1849_p1), %s1535_s23, 4294963200  ;;  %p17_p2 = scmp.ge.s32.totalorder %s2025_s30, 6   ;;  %s2454_s24 = smov %s1945_s25 }
 0x2bc   : > { %s2455_s25 = smov %s1949_s26  ;;  %s2456_s26 = smov %s2036_s10 }
 0x2bd   : > { %s2457_s27 = smov %s2025_s30  ;;  %19 = sbr.rel (!%p17_p2) target bundleno = 3 (0x3), region = 83 }
 0x2c2   :  { %1540 = vsyncpa [#allocation3], 1 }
 0x2c3   :  { %1542 = vsyncpa [#allocation3 + $0x1], 1 }

</bundles_post_ra>
